<compile_context>
chip_gen: v7x
topology: tpu7x:2x2x1
jax: 0.10.0
libtpu: 0.0.40
codegen_flags: <defaults>
</compile_context>

<pallas_src>
import functools
import math

import jax
import jax.numpy as jnp
from jax.experimental import pallas as pl
from jax.experimental.pallas import tpu as pltpu


def _round_up(x: int, m: int) -> int:
    return (x + m - 1) // m * m


def _pick_tile(dim: int, max_tile: int, granule: int, min_tile: int) -> int:
    """Largest tile <= max_tile that is a multiple of `granule` and divides `dim`
    (dim is already a multiple of granule).  Falls back to one full tile of padding
    at most when no divisor >= min_tile exists."""
    if dim <= max_tile:
        return dim
    floor = max(granule, min(min_tile, max_tile))
    t = (max_tile // granule) * granule
    while t >= floor:
        if dim % t == 0:
            return t
        t -= granule
    return (max_tile // granule) * granule


# ----------------------------------------------------------------------------- kernels

def _fc_kernel_single_k(x_ref, w_ref, b_ref, o_ref, *, use_relu: bool):
    # Whole K in one step: no accumulator scratch, no RMW, bias+ReLU fused.
    out = jnp.dot(x_ref[...], w_ref[...], preferred_element_type=jnp.float32)
    out = out + b_ref[...].astype(jnp.float32)
    if use_relu:
        out = jnp.maximum(out, 0.0)
    o_ref[...] = out.astype(o_ref.dtype)


def _fc_kernel_multi_k(x_ref, w_ref, b_ref, o_ref, acc_ref, *, use_relu: bool):
    # x_ref: (tm, tk)  w_ref: (tk, tn)  b_ref: (1, tn)  o_ref: (tm, tn)  acc_ref: (tm, tn) f32
    k = pl.program_id(2)
    prod = jnp.dot(x_ref[...], w_ref[...], preferred_element_type=jnp.float32)

    @pl.when(k == 0)
    def _():
        acc_ref[...] = prod            # direct store: no zero-fill + '+=' on the first step

    @pl.when(k > 0)
    def _():
        acc_ref[...] += prod

    @pl.when(k == pl.num_programs(2) - 1)
    def _():
        out = acc_ref[...] + b_ref[...].astype(jnp.float32)
        if use_relu:
            out = jnp.maximum(out, 0.0)
        o_ref[...] = out.astype(o_ref.dtype)


# ----------------------------------------------------------------------------- wrapper

def prepare_fc_params(weight, bias, mxu_dtype=None):
    """Pad W -> (round_up(in,128), round_up(out,128)) and b -> (1, round_up(out,128)) ONCE,
    outside the per-call hot path (saves a full KxN HBM read+write on every forward).

    weight: [in_size, out_size] (transpose of PyTorch nn.Linear.weight), bias: [out_size].
    Returns (w_padded, b_padded, out_size)."""
    in_size, out_size = weight.shape
    K = _round_up(in_size, 128)
    N = _round_up(out_size, 128)
    w = weight
    if (K, N) != w.shape:
        w = jnp.pad(w, ((0, K - in_size), (0, N - out_size)))
    if mxu_dtype is not None and w.dtype != mxu_dtype:
        w = w.astype(mxu_dtype)
    b = bias.reshape(1, out_size)
    if N != out_size:
        b = jnp.pad(b, ((0, 0), (0, N - out_size)))
    return w, b, out_size


def fc_forward(x, weight, bias, *, out_size=None, act_relu: bool = True,
               dropout_r: float = 0.0, training: bool = False, dropout_key=None,
               tm: int = 512, tn: int = 512, tk: int = 1024, mxu_dtype=None):
    """Pallas implementation of FC.forward (Linear [+ReLU] [+Dropout]).

    x:      [..., in_size]
    weight: [in_size, out_size] (unpadded) or the pre-padded output of prepare_fc_params
    bias:   [out_size] or pre-padded (1, N)
    out_size: required when passing pre-padded params.
    mxu_dtype: e.g. jnp.bfloat16 to halve x/W HBM bytes and use the bf16 MXU rate
               (f32 accumulation is kept; changes numerics slightly).
    """
    *lead, in_size = x.shape
    m = int(math.prod(lead)) if lead else 1
    if out_size is None:
        out_size = weight.shape[1]          # assumes unpadded weight
    out_dtype = x.dtype
    compute_dtype = jnp.dtype(mxu_dtype) if mxu_dtype is not None else jnp.dtype(x.dtype)
    itemsize = compute_dtype.itemsize
    m_sub = {4: 8, 2: 16, 1: 32}.get(itemsize, 8)

    # ---- tile selection: divisors of the 128-rounded dims (no wasteful over-padding) ----
    K = _round_up(in_size, 128)
    N = _round_up(out_size, 128)
    M0 = _round_up(m, m_sub)

    tm_eff = _pick_tile(M0, tm, m_sub, 128)
    M = _round_up(M0, tm_eff)

    tn_eff = _pick_tile(N, tn, 128, 256)
    Npad = _round_up(N, tn_eff)

    # single-k fast path: whole K in one step when it fits the VMEM budget
    tk_single_cap = max(tk, 8192 // itemsize)      # 2048 fp32 / 4096 bf16
    if K <= tk_single_cap:
        tk_eff = K
    else:
        tk_eff = _pick_tile(K, tk, 128, 256)
    Kpad = _round_up(K, tk_eff)

    # v7x: make sure both TensorCores get work (>= 2 parallel tiles) for non-tiny problems
    if (M // tm_eff) * (Npad // tn_eff) < 2:
        if Npad // tn_eff == 1 and tn_eff >= 256 and tn_eff % 256 == 0:
            tn_eff //= 2
        elif M // tm_eff == 1 and tm_eff >= 256 and tm_eff % (2 * m_sub) == 0:
            tm_eff //= 2

    grid_i = M // tm_eff
    grid_j = Npad // tn_eff
    grid_k = Kpad // tk_eff

    # ---- operand padding (x per call; W/b only if not already prepared) ----
    x2d = x.reshape(m, in_size)
    if x2d.dtype != compute_dtype:
        x2d = x2d.astype(compute_dtype)
    if (M, Kpad) != x2d.shape:
        x2d = jnp.pad(x2d, ((0, M - m), (0, Kpad - in_size)))   # zero K-pad is exact

    w2d = weight
    if w2d.dtype != compute_dtype:
        w2d = w2d.astype(compute_dtype)
    if w2d.shape != (Kpad, Npad):
        wk, wn = w2d.shape
        w2d = jnp.pad(w2d, ((0, Kpad - wk), (0, Npad - wn)))

    b2d = bias if bias.ndim == 2 else bias.reshape(1, -1)
    if b2d.shape[1] != Npad:
        b2d = jnp.pad(b2d, ((0, 0), (0, Npad - b2d.shape[1])))

    # ---- cost estimate reflecting actual re-streaming ----
    out_itemsize = jnp.dtype(out_dtype).itemsize
    bytes_io = (grid_j * M * Kpad * itemsize                 # x read once per N-tile
                + grid_i * Kpad * Npad * itemsize            # W read once per M-tile
                + grid_i * grid_k * Npad * b2d.dtype.itemsize
                + M * Npad * out_itemsize)
    flops = 2 * M * Npad * Kpad

    # ---- scoped VMEM limit (bump only when the v5e 16 MiB default would be exceeded) ----
    vmem_est = (2 * (tm_eff * tk_eff + tk_eff * tn_eff + tn_eff) * itemsize
                + 2 * tm_eff * tn_eff * out_itemsize
                + (0 if grid_k == 1 else tm_eff * tn_eff * 4))
    vmem_limit = None
    if vmem_est > (14 << 20):
        vmem_limit = min(48 << 20, max(32 << 20, int(vmem_est * 3 // 2)))

    cost = pl.CostEstimate(flops=flops, transcendentals=0, bytes_accessed=bytes_io)

    if grid_k == 1:
        kernel = functools.partial(_fc_kernel_single_k, use_relu=act_relu)
        out2d = pl.pallas_call(
            kernel,
            out_shape=jax.ShapeDtypeStruct((M, Npad), out_dtype),
            grid_spec=pltpu.PrefetchScalarGridSpec(
                num_scalar_prefetch=0,
                grid=(grid_i, grid_j),
                in_specs=[
                    pl.BlockSpec((tm_eff, Kpad), lambda i, j: (i, 0)),
                    pl.BlockSpec((Kpad, tn_eff), lambda i, j: (0, j)),
                    pl.BlockSpec((1, tn_eff), lambda i, j: (0, j)),
                ],
                out_specs=pl.BlockSpec((tm_eff, tn_eff), lambda i, j: (i, j)),
            ),
            compiler_params=pltpu.CompilerParams(
                dimension_semantics=("parallel", "parallel"),
                vmem_limit_bytes=vmem_limit),
            cost_estimate=cost,
        )(x2d, w2d, b2d)
    else:
        kernel = functools.partial(_fc_kernel_multi_k, use_relu=act_relu)
        out2d = pl.pallas_call(
            kernel,
            out_shape=jax.ShapeDtypeStruct((M, Npad), out_dtype),
            grid_spec=pltpu.PrefetchScalarGridSpec(
                num_scalar_prefetch=0,
                grid=(grid_i, grid_j, grid_k),
                in_specs=[
                    pl.BlockSpec((tm_eff, tk_eff), lambda i, j, k: (i, k)),
                    pl.BlockSpec((tk_eff, tn_eff), lambda i, j, k: (k, j)),
                    pl.BlockSpec((1, tn_eff), lambda i, j, k: (0, j)),
                ],
                out_specs=pl.BlockSpec((tm_eff, tn_eff), lambda i, j, k: (i, j)),
                scratch_shapes=[pltpu.VMEM((tm_eff, tn_eff), jnp.float32)],
            ),
            compiler_params=pltpu.CompilerParams(
                dimension_semantics=("parallel", "parallel", "arbitrary"),
                vmem_limit_bytes=vmem_limit),
            cost_estimate=cost,
        )(x2d, w2d, b2d)

    out = out2d[:m, :out_size].reshape(*lead, out_size)

    # Dropout (matches nn.Dropout: identity in eval mode, inverted dropout in training).
    if dropout_r > 0.0 and training:
        if dropout_key is None:
            raise ValueError("training-mode dropout requires dropout_key")
        keep = jax.random.bernoulli(dropout_key, 1.0 - dropout_r, out.shape)
        out = jnp.where(keep, out / (1.0 - dropout_r), jnp.zeros_like(out))
        # TODO(synk): fuse dropout into the kernel epilogue via pltpu.prng_seed + prng_random_bits.
    return out


def init_linear_params(key, in_size, out_size, dtype=jnp.float32):
    """Deterministic init matching PyTorch nn.Linear bounds (weight stored [in, out])."""
    kw, kb = jax.random.split(key)
    bound = 1.0 / math.sqrt(in_size)
    weight = jax.random.uniform(kw, (in_size, out_size), dtype, -bound, bound)
    bias = jax.random.uniform(kb, (out_size,), dtype, -bound, bound)
    return weight, bias


if __name__ == "__main__":
    key = jax.random.PRNGKey(0)
    k_x, k_p = jax.random.split(key)

    # FC(in_size=32, out_size=64, dropout_r=0.0, act=nn.ReLU)
    batch, seq, in_size, out_size = 2, 8, 32, 64
    x = jax.random.normal(k_x, (batch, seq, in_size), dtype=jnp.float32)
    weight, bias = init_linear_params(k_p, in_size, out_size)

    # Hoist the weight/bias padding out of the per-call hot path (done once at init time).
    w_pad, b_pad, logical_out = prepare_fc_params(weight, bias)

    y = fc_forward(x, w_pad, b_pad, out_size=logical_out,
                   act_relu=True, dropout_r=0.0, training=False)
    y = jax.block_until_ready(y)

    # sanity check against plain-JAX reference
    ref = jnp.maximum(x @ weight + bias, 0.0)
    assert y.shape == (batch, seq, out_size)
    assert jnp.allclose(y, ref, atol=1e-5, rtol=1e-5)

    print("KERNEL_OK")
</pallas_src>

<mosaic_0001>
module attributes {stable_mosaic.version = 11 : i64} {
  func.func @_fc_kernel_single_k(%arg0: i32, %arg1: i32, %arg2: memref<16x128xf32, #tpu.memory_space<vmem>>, %arg3: memref<128x128xf32, #tpu.memory_space<vmem>>, %arg4: memref<1x128xf32, #tpu.memory_space<vmem>>, %arg5: memref<16x128xf32, #tpu.memory_space<vmem>>) attributes {dimension_semantics = [#tpu.dimension_semantics<parallel>, #tpu.dimension_semantics<parallel>], iteration_bounds = array<i64: 1, 1>, scalar_prefetch = 0 : i64, scratch_operands = 0 : i64, tpu.core_type = #tpu.core_type<tc>, window_params = [{transform_indices = @transform_0, window_bounds = array<i64: 16, 128>}, {transform_indices = @transform_1, window_bounds = array<i64: 128, 128>}, {transform_indices = @transform_2, window_bounds = array<i64: 1, 128>}, {transform_indices = @transform_3, window_bounds = array<i64: 16, 128>}]} {
    %c0 = arith.constant 0 : index
    %c0_0 = arith.constant 0 : index
    %0 = vector.load %arg2[%c0, %c0_0] : memref<16x128xf32, #tpu.memory_space<vmem>>, vector<16x128xf32>
    %c0_1 = arith.constant 0 : index
    %c0_2 = arith.constant 0 : index
    %1 = vector.load %arg3[%c0_1, %c0_2] : memref<128x128xf32, #tpu.memory_space<vmem>>, vector<128x128xf32>
    %cst = arith.constant dense<0.000000e+00> : vector<16x128xf32>
    %2 = tpu.matmul %0, %1, %cst {dimension_numbers = #tpu.dot_dimension_numbers<[1], [0], [0], [1], [0, 0, 1, 1], [], []>} : vector<16x128xf32>, vector<128x128xf32>, vector<16x128xf32> -> vector<16x128xf32>
    %c0_3 = arith.constant 0 : index
    %c0_4 = arith.constant 0 : index
    %3 = vector.load %arg4[%c0_3, %c0_4] : memref<1x128xf32, #tpu.memory_space<vmem>>, vector<1x128xf32>
    %4 = vector.broadcast %3 : vector<1x128xf32> to vector<16x128xf32>
    %5 = arith.addf %2, %4 : vector<16x128xf32>
    %cst_5 = arith.constant 0.000000e+00 : f32
    %6 = vector.broadcast %cst_5 : f32 to vector<16x128xf32>
    %7 = arith.maximumf %5, %6 : vector<16x128xf32>
    %c0_6 = arith.constant 0 : index
    %c0_7 = arith.constant 0 : index
    %8 = vector.load %arg5[%c0_6, %c0_7] : memref<16x128xf32, #tpu.memory_space<vmem>>, vector<16x128xf32>
    tpu.vector_store %arg5[%c0_6, %c0_7], %7 {strides = array<i32>} : memref<16x128xf32, #tpu.memory_space<vmem>>, vector<16x128xf32>,
    return
  }
  func.func @transform_0(%arg0: i32, %arg1: i32) -> (i32, i32) {
    %c0_i32 = arith.constant 0 : i32
    %c0_i32_0 = arith.constant 0 : i32
    return %arg0, %c0_i32 : i32, i32
  }
  func.func @transform_1(%arg0: i32, %arg1: i32) -> (i32, i32) {
    %c0_i32 = arith.constant 0 : i32
    %c0_i32_0 = arith.constant 0 : i32
    return %c0_i32, %arg1 : i32, i32
  }
  func.func @transform_2(%arg0: i32, %arg1: i32) -> (i32, i32) {
    %c0_i32 = arith.constant 0 : i32
    %c0_i32_0 = arith.constant 0 : i32
    return %c0_i32, %arg1 : i32, i32
  }
  func.func @transform_3(%arg0: i32, %arg1: i32) -> (i32, i32) {
    %c0_i32 = arith.constant 0 : i32
    return %arg0, %arg1 : i32, i32
  }
}

</mosaic_0001>

<bundles_post_ra>
// kernel: tpu_custom_call.1
= control target key start
LH: loop header
LB: loop body
LE: loop exit
PB: predicated region body
PF: predicated region fallthrough
CT: control target
= control target key end

     0   :  { %8 = vsyncpa [#allocation3], 0  ;;  %s401_s0 = inlined_call_operand.hbm [shape: f32[16,128], index: 0, kind: input, shape index: {}]   ;;  %s402_s1 = inlined_call_operand.hbm [shape: f32[128,128], index: 1, kind: input, shape index: {}]   ;;  %s403_s2 = inlined_call_operand.vmem [shape: f32[1,128], index: 2, kind: input, shape index: {}]   ;;  %s404_s3 = inlined_call_operand.hbm [shape: f32[16,128], index: 3, kind: output, shape index: {}]  }
   0x1   :  { %9 = vsyncpa [#allocation6], 0 }
   0x2   :  { %10 = vsyncpa [#allocation4], 0  ;;  %s328_s12 = smov [#allocation2]   ;;  %s256_s16 = scalar_lea.hbm %s401_s0, 256 }
   0x3   :  { %s16_s13 = sshll.u32 %s328_s12, 4  ;;  %p257_p0 = scmp.ne.s32.totalorder %s401_s0, %s256_s16  ;;  %s17_s13 = int_to_ptr.vmem [resolvable:$true] %s16_s13 }
   0x4   :  { %p260_p1 = scmp.lt.u32.totalorder %s256_s16, %s401_s0 }
   0x6   :  { %p262_p2 = pnand %p260_p1, %p257_p0 }
   0x8   :  { %265 = shalt.err (!%p262_p2)
}
   0x9   :  { %s266_s21 = scalar_lea.vmem %s17_s13, 256  ;;  %p271_p4 = scmp.lt.s32.totalorder %s17_s13, %s17_s13 }
   0xa   :  { %p267_p3 = scmp.ne.s32.totalorder %s17_s13, %s266_s21  ;;  %p272_p5 = scmp.lt.s32.totalorder %s266_s21, %s266_s21 }
   0xc   :  { %p273_p6 = por %p272_p5, %p271_p4 }
   0xe   :  { %p274_p7 = pnand %p273_p6, %p267_p3 }
  0x10   :  { %277 = shalt.err (!%p274_p7)
}
  0x11   :  { %s329_s22 = smov 128   ;;  %s330_s23 = smov 8  }
  0x12   :  { %22 = dma.hbm_to_vmem [thread:$0]  %s401_s0, 256, %s17_s13, [#allocation3], %s329_s22, %s329_s22, %s330_s23  }
  0x13   :  { %s331_s26 = smov [#allocation5]   ;;  %s278_s30 = scalar_lea.hbm %s402_s1, 2048 }
  0x14   :  { %s28_s27 = sshll.u32 %s331_s26, 4  ;;  %p279_p8 = scmp.ne.s32.totalorder %s402_s1, %s278_s30  ;;  %s29_s27 = int_to_ptr.vmem [resolvable:$true] %s28_s27 }
  0x15   :  { %p282_p9 = scmp.lt.u32.totalorder %s278_s30, %s402_s1 }
  0x17   :  { %p284_p10 = pnand %p282_p9, %p279_p8 }
  0x19   :  { %287 = shalt.err (!%p284_p10)
}
  0x1a   :  { %s288_s8 = scalar_lea.vmem %s29_s27, 2048  ;;  %p293_p12 = scmp.lt.s32.totalorder %s29_s27, %s29_s27 }
  0x1b   :  { %p289_p11 = scmp.ne.s32.totalorder %s29_s27, %s288_s8  ;;  %p294_p13 = scmp.lt.s32.totalorder %s288_s8, %s288_s8 }
  0x1d   :  { %p295_p0 = por %p294_p13, %p293_p12 }
  0x1f   :  { %p296_p1 = pnand %p295_p0, %p289_p11 }
  0x21   :  { %299 = shalt.err (!%p296_p1)
}
  0x22   :  { %34 = dma.hbm_to_vmem [thread:$0]  %s402_s1, 2048, %s29_s27, [#allocation6], %s329_s22, %s329_s22, %s330_s23  }
  0x23   :  { %322 = dma.done.wait [#allocation3], 256  }
  0x24   :  { %323 = vsyncadd [#allocation3], 4294967040 }
  0x25   :  { %324 = dma.done.wait [#allocation6], 2048  }
  0x26   :  { %325 = vsyncadd [#allocation6], 4294965248  ;;  %v45_v0 = vld [vmem:[#allocation5] sm:$0xff]  ;;  %v46_v1 = vld [vmem:[#allocation5 + $0x8] sm:$0xff]  ;;  %s332_s11 = smov [#allocation7]  }
  0x27   :  { %v47_v2 = vld [vmem:[#allocation5 + $0x10] sm:$0xff]  ;;  %v219_v3 = vpack.c.bf16 %v46_v1, %v45_v0  ;;  %v48_v4 = vld [vmem:[#allocation5 + $0x18] sm:$0xff]  ;;  %v49_v6 = vld [vmem:[#allocation5 + $0x20] sm:$0xff]  ;;  %s152_s12 = sshll.u32 %s332_s11, 4  ;;  %s153_s12 = int_to_ptr.vmem [resolvable:$true] %s152_s12 }
  0x28   :  { %v223_v5 = vpack.c.bf16 %v48_v4, %v47_v2  ;;  %v50_v7 = vld [vmem:[#allocation5 + $0x28] sm:$0xff]  ;;  %v43_v9 = vld [vmem:[#allocation2] sm:$0xff]  ;;  %v52_v11 = vld [vmem:[#allocation5 + $0x38] sm:$0xff]  ;;  %s300_s13 = scalar_lea.vmem %s153_s12, 256  ;;  %p305_p3 = scmp.lt.s32.totalorder %s153_s12, %s153_s12 }
  0x29   :  { %220 = vmatprep.subr.bf16.mxu0 %v219_v3  ;;  %v227_v8 = vpack.c.bf16 %v50_v7, %v49_v6  ;;  %v51_v10 = vld [vmem:[#allocation5 + $0x30] sm:$0xff]  ;;  %216 = vmatprep.mubr.f32.mxu0 %v43_v9  ;;  %v53_v13 = vld [vmem:[#allocation5 + $0x40] sm:$0xff]  ;;  %v54_v14 = vld [vmem:[#allocation5 + $0x48] sm:$0xff]  ;;  %p301_p2 = scmp.ne.s32.totalorder %s153_s12, %s300_s13  ;;  %p306_p4 = scmp.lt.s32.totalorder %s300_s13, %s300_s13 }
  0x2a   :  { %222 = vmatpush3.bf16.msra.mxu0 %v219_v3  ;;  %v231_v12 = vpack.c.bf16 %v52_v11, %v51_v10  ;;  %v235_v15 = vpack.c.bf16 %v54_v14, %v53_v13  ;;  %v55_v16 = vld [vmem:[#allocation5 + $0x50] sm:$0xff]  ;;  %v56_v17 = vld [vmem:[#allocation5 + $0x58] sm:$0xff]  ;;  %v57_v19 = vld [vmem:[#allocation5 + $0x60] sm:$0xff] }
  0x2b   :  { %224 = vmatprep.subr.bf16.mxu0 %v223_v5  ;;  %v239_v18 = vpack.c.bf16 %v56_v17, %v55_v16  ;;  %v58_v20 = vld [vmem:[#allocation5 + $0x68] sm:$0xff]  ;;  %v59_v22 = vld [vmem:[#allocation5 + $0x70] sm:$0xff]  ;;  %v60_v23 = vld [vmem:[#allocation5 + $0x78] sm:$0xff]  ;;  %p307_p5 = por %p306_p4, %p305_p3 }
  0x2c   :  { %v243_v21 = vpack.c.bf16 %v58_v20, %v57_v19  ;;  %v247_v24 = vpack.c.bf16 %v60_v23, %v59_v22  ;;  %v44_v25 = vld [vmem:[#allocation2 + $0x8] sm:$0xff]  ;;  %v165_v26 = vld [vmem:[%s403_s2] ss:$0 sm:$0xff] }
  0x2d   :  { %p308_p6 = pnand %p307_p5, %p301_p2 }
  0x2e   :  { %226 = vmatpush3.bf16.msra.mxu0 %v223_v5 }
  0x2f   :  { %228 = vmatprep.subr.bf16.mxu0 %v227_v8 }
  0x32   :  { %230 = vmatpush3.bf16.msra.mxu0 %v227_v8 }
  0x33   :  { %232 = vmatprep.subr.bf16.mxu0 %v231_v12 }
  0x36   :  { %234 = vmatpush3.bf16.msra.mxu0 %v231_v12 }
  0x37   :  { %236 = vmatprep.subr.bf16.mxu0 %v235_v15 }
  0x3a   :  { %238 = vmatpush3.bf16.msra.mxu0 %v235_v15 }
  0x3b   :  { %240 = vmatprep.subr.bf16.mxu0 %v239_v18 }
  0x3e   :  { %242 = vmatpush3.bf16.msra.mxu0 %v239_v18 }
  0x3f   :  { %244 = vmatprep.subr.bf16.mxu0 %v243_v21 }
  0x42   :  { %246 = vmatpush3.bf16.msra.mxu0 %v243_v21 }
  0x43   :  { %248 = vmatprep.subr.bf16.mxu0 %v247_v24 }
  0x46   :  { %250 = vmatpush3.bf16.msra.mxu0 %v247_v24 }
  0x49   :  { %217 = vmatmul.mubr.f32.vlgmr.msra.gmra.mrb[0].mxu0 %v44_v25 }
 0x11c   :  { %v218_v27 = vpop.f32.mrb[0].mxu0 }
 0x11d   :  { %v140_v28 = vadd.f32 %v218_v27, %v165_v26  ;;  %v134_v29 = vpop.f32.mrb[1].mxu0 }
 0x11e   :  { %v135_v30 = vadd.f32 %v165_v26, %v134_v29 }
 0x11f   :  { %v144_v31 = vmax.f32 %v140_v28, 0.0 }
 0x120   :  { %v143_v32 = vmax.f32 %v135_v30, 0.0 }
 0x121   :  { %146 = vst [vmem:[#allocation7 + $0x8] sm:$0xff] %v144_v31 }
 0x122   :  { %145 = vst [vmem:[#allocation7] sm:$0xff] %v143_v32 }
 0x123   :  { %311 = shalt.err (!%p308_p6)
}
 0x124   :  { %s312_s15 = scalar_lea.hbm %s404_s3, 256 }
 0x125   :  { %p313_p7 = scmp.ne.s32.totalorder %s404_s3, %s312_s15  ;;  %p316_p8 = scmp.lt.u32.totalorder %s312_s15, %s404_s3 }
 0x127   :  { %p318_p9 = pnand %p316_p8, %p313_p7 }
 0x129   :  { %321 = shalt.err (!%p318_p9)
}
 0x12a   :  { %158 = dma.vmem_to_hbm [thread:$0]  %s153_s12, 256, %s404_s3, [#allocation4], %s329_s22, %s329_s22, %s330_s23  }
 0x12b   :  { %326 = dma.done.wait [#allocation4], 256  }
 0x12c   :  { %327 = vsyncadd [#allocation4], 4294967040 }
 0x12d   :  { %162 = vsyncpa [#allocation3], 1 }
 0x12e   :  { %163 = vsyncpa [#allocation6], 1 }
 0x12f   :  { %164 = vsyncpa [#allocation4], 1 }

</bundles_post_ra>
